<compile_context>
chip_gen: v6e
topology: v6e:2x2x1
jax: 0.10.0
libtpu: 0.0.40
codegen_flags: <defaults>
</compile_context>

<pallas_src>
import functools

import jax
import jax.numpy as jnp
from jax import lax
from jax.experimental import pallas as pl
from jax.experimental.pallas import tpu as pltpu

_MIB = 1024 * 1024


def _vmem_capacity_bytes():
    """Per-TensorCore VMEM capacity; conservative (v7x, 64 MiB) fallback."""
    try:
        return int(pltpu.get_tpu_info().vmem_capacity_bytes)
    except Exception:
        return 64 * _MIB


def _linear_kernel_single_k(x_ref, w_ref, b_ref, o_ref):
    """y tile = x_tile @ W_tile^T + b_tile when K fits in one tile (no scratch)."""
    out = lax.dot_general(
        x_ref[...],
        w_ref[...],
        dimension_numbers=(((1,), (1,)), ((), ())),  # contract on K; W stays [N, K]
        preferred_element_type=jnp.float32,
    )
    out = out + b_ref[...].astype(jnp.float32)
    o_ref[...] = out.astype(o_ref.dtype)


def _linear_kernel_acc(x_ref, w_ref, b_ref, o_ref, acc_ref):
    """One (tm, tn, tk) step of y = x @ W^T + b with a K-reduction accumulator.

    x_ref : [tm, tk]   activation tile
    w_ref : [tn, tk]   weight tile, PyTorch layout (contract on K = dim 1)
    b_ref : [1,  tn]   bias tile
    o_ref : [tm, tn]   output tile
    acc_ref: [tm, tn]  f32 accumulator (scratch, persists across K steps)
    """
    k = pl.program_id(2)

    @pl.when(k == 0)
    def _():
        acc_ref[...] = jnp.zeros_like(acc_ref)

    acc_ref[...] += lax.dot_general(
        x_ref[...],
        w_ref[...],
        dimension_numbers=(((1,), (1,)), ((), ())),
        preferred_element_type=jnp.float32,
    )

    @pl.when(k == pl.num_programs(2) - 1)
    def _():
        out = acc_ref[...] + b_ref[...].astype(jnp.float32)
        o_ref[...] = out.astype(o_ref.dtype)


def _pick_k_tile(K):
    # K is only tiled when the tile divides it evenly (padding garbage would
    # corrupt the reduction). K <= 1024 is kept whole so small/medium linears
    # take the single-K (no accumulator) kernel.
    if K <= 1024:
        return K
    for cand in (1024, 512, 256, 128):
        if K % cand == 0:
            return cand
    return K  # no clean power-of-two divisor: keep K whole (one reduction step)


def _pick_n_tile(N):
    # Lane-dense, MXU-aligned output tiles; small N falls back to the full dim.
    for cand in (512, 256, 128):
        if N >= cand:
            return cand
    return N


def _pick_m_tile(M, cap):
    return M if M <= cap else cap  # cap is a multiple of 8 (sublane friendly)


@functools.partial(jax.jit, static_argnames=("cast_operands_to_bf16",))
def linear_regression_forward(x, w, b, *, cast_operands_to_bf16=False):
    """y = x @ w.T + b   (matches torch.nn.Linear forward).

    x: [M, K] activations; w: [N, K] weight in PyTorch layout (never transposed
    here); b: [N] bias. cast_operands_to_bf16 opts into bf16 MXU operands
    (f32 accumulation and f32 bias add are kept) for bf16-native MXUs.
    """
    M, K = x.shape
    N, K2 = w.shape
    assert K == K2, "weight inner dim must match x inner dim"

    out_dtype = x.dtype
    if cast_operands_to_bf16:
        x = x.astype(jnp.bfloat16)
        w = w.astype(jnp.bfloat16)
    b2 = b.reshape(1, N)  # cheap reshape of a length-N vector

    vmem_cap = _vmem_capacity_bytes()
    big_vmem = vmem_cap >= 100 * _MIB  # v5e / v6e (128 MiB); v7x has 64 MiB
    tm_cap = 2048 if big_vmem else 1024

    tk = _pick_k_tile(K)
    tn = _pick_n_tile(N)
    tm = _pick_m_tile(M, tm_cap)

    # Guarantee >= 2 parallel output tiles so both v7x TensorCores get work.
    if pl.cdiv(M, tm) * pl.cdiv(N, tn) < 2:
        if M >= 16:
            tm = max(8, ((tm // 2 + 7) // 8) * 8)
        elif N >= 256:
            tn = max(128, tn // 2)

    kt = pl.cdiv(K, tk)
    grid_mn = (pl.cdiv(M, tm), pl.cdiv(N, tn))

    # VMEM budget: double-buffered x/W/out/bias tiles (+ f32 accumulator when
    # K is tiled), with headroom, clamped per generation (<=48 MiB on v7x,
    # <=100 MiB on 128-MiB chips).
    itemsize = jnp.dtype(x.dtype).itemsize
    out_itemsize = jnp.dtype(out_dtype).itemsize
    acc_bytes = tm * tn * 4 if kt > 1 else 0
    tile_bytes = (
        2 * (tm * tk + tn * tk + tn) * itemsize
        + 2 * tm * tn * out_itemsize
        + acc_bytes
    )
    budget = (100 * _MIB) if big_vmem else (48 * _MIB)
    vmem_limit = int(min(budget, max(32 * _MIB, 2 * tile_bytes)))

    if kt == 1:
        # K fits in one tile: 2-D grid, no scratch accumulator, no pl.when epilogue.
        grid_spec = pltpu.PrefetchScalarGridSpec(
            num_scalar_prefetch=0,
            grid=grid_mn,
            in_specs=[
                pl.BlockSpec((tm, tk), lambda i, j: (i, 0)),  # x tile
                pl.BlockSpec((tn, tk), lambda i, j: (j, 0)),  # W tile (PyTorch [N,K])
                pl.BlockSpec((1, tn), lambda i, j: (0, j)),   # bias tile
            ],
            out_specs=pl.BlockSpec((tm, tn), lambda i, j: (i, j)),
        )
        kernel = _linear_kernel_single_k
        dims = ("parallel", "parallel")
    else:
        grid_spec = pltpu.PrefetchScalarGridSpec(
            num_scalar_prefetch=0,
            grid=grid_mn + (kt,),
            in_specs=[
                pl.BlockSpec((tm, tk), lambda i, j, k: (i, k)),  # x tile
                pl.BlockSpec((tn, tk), lambda i, j, k: (j, k)),  # W tile (PyTorch [N,K])
                pl.BlockSpec((1, tn), lambda i, j, k: (0, j)),   # bias tile
            ],
            out_specs=pl.BlockSpec((tm, tn), lambda i, j, k: (i, j)),
            scratch_shapes=[pltpu.VMEM((tm, tn), jnp.float32)],
        )
        kernel = _linear_kernel_acc
        dims = ("parallel", "parallel", "arbitrary")

    return pl.pallas_call(
        kernel,
        out_shape=jax.ShapeDtypeStruct((M, N), out_dtype),
        grid_spec=grid_spec,
        compiler_params=pltpu.CompilerParams(
            dimension_semantics=dims,
            vmem_limit_bytes=vmem_limit,
        ),
    )(x, w, b2)


if __name__ == "__main__":
    key = jax.random.PRNGKey(0)

    # --- Primary check: small shapes consistent with the module -------------
    batch, input_dim, output_dim = 8, 32, 16
    kx, kw, kb = jax.random.split(key, 3)

    # Deterministic parameter init mimicking nn.Linear's uniform(-1/sqrt(K), 1/sqrt(K)).
    bound = 1.0 / jnp.sqrt(jnp.float32(input_dim))
    w = jax.random.uniform(kw, (output_dim, input_dim), jnp.float32, -bound, bound)
    b = jax.random.uniform(kb, (output_dim,), jnp.float32, -bound, bound)
    x = jax.random.normal(kx, (batch, input_dim), jnp.float32)

    y = jax.block_until_ready(linear_regression_forward(x, w, b))
    y_ref = x @ w.T + b
    assert y.shape == (batch, output_dim)
    assert jnp.allclose(y, y_ref, atol=1e-5, rtol=1e-5)

    # --- Regression check: N not a multiple of the tile size (ragged tail) --
    M2, K2, N2 = 200, 96, 200
    kx2, kw2, kb2 = jax.random.split(jax.random.PRNGKey(1), 3)
    bound2 = 1.0 / jnp.sqrt(jnp.float32(K2))
    w2 = jax.random.uniform(kw2, (N2, K2), jnp.float32, -bound2, bound2)
    b2 = jax.random.uniform(kb2, (N2,), jnp.float32, -bound2, bound2)
    x2 = jax.random.normal(kx2, (M2, K2), jnp.float32)

    y2 = jax.block_until_ready(linear_regression_forward(x2, w2, b2))
    y2_ref = x2 @ w2.T + b2
    assert y2.shape == (M2, N2)
    assert jnp.allclose(y2, y2_ref, atol=1e-4, rtol=1e-4)

    print("KERNEL_OK")
</pallas_src>

<mosaic_0001>
module attributes {stable_mosaic.version = 11 : i64} {
  func.func @_linear_kernel_single_k(%arg0: i32, %arg1: i32, %arg2: memref<8x32xf32, #tpu.memory_space<vmem>>, %arg3: memref<16x32xf32, #tpu.memory_space<vmem>>, %arg4: memref<1x16xf32, #tpu.memory_space<vmem>>, %arg5: memref<8x16xf32, #tpu.memory_space<vmem>>) attributes {dimension_semantics = [#tpu.dimension_semantics<parallel>, #tpu.dimension_semantics<parallel>], iteration_bounds = array<i64: 1, 1>, scalar_prefetch = 0 : i64, scratch_operands = 0 : i64, tpu.core_type = #tpu.core_type<tc>, window_params = [{transform_indices = @transform_0, window_bounds = array<i64: 8, 32>}, {transform_indices = @transform_1, window_bounds = array<i64: 16, 32>}, {transform_indices = @transform_2, window_bounds = array<i64: 1, 16>}, {transform_indices = @transform_3, window_bounds = array<i64: 8, 16>}]} {
    %c0 = arith.constant 0 : index
    %c0_0 = arith.constant 0 : index
    %0 = vector.load %arg2[%c0, %c0_0] : memref<8x32xf32, #tpu.memory_space<vmem>>, vector<8x32xf32>
    %c0_1 = arith.constant 0 : index
    %c0_2 = arith.constant 0 : index
    %1 = vector.load %arg3[%c0_1, %c0_2] : memref<16x32xf32, #tpu.memory_space<vmem>>, vector<16x32xf32>
    %cst = arith.constant dense<0.000000e+00> : vector<8x16xf32>
    %2 = tpu.matmul %0, %1, %cst {dimension_numbers = #tpu.dot_dimension_numbers<[1], [1], [0], [0], [0, 0, 1, 0], [], []>} : vector<8x32xf32>, vector<16x32xf32>, vector<8x16xf32> -> vector<8x16xf32>
    %c0_3 = arith.constant 0 : index
    %c0_4 = arith.constant 0 : index
    %3 = vector.load %arg4[%c0_3, %c0_4] : memref<1x16xf32, #tpu.memory_space<vmem>>, vector<1x16xf32>
    %4 = vector.broadcast %3 : vector<1x16xf32> to vector<8x16xf32>
    %5 = arith.addf %2, %4 : vector<8x16xf32>
    %c0_5 = arith.constant 0 : index
    %c0_6 = arith.constant 0 : index
    %6 = vector.load %arg5[%c0_5, %c0_6] : memref<8x16xf32, #tpu.memory_space<vmem>>, vector<8x16xf32>
    tpu.vector_store %arg5[%c0_5, %c0_6], %5 {strides = array<i32>} : memref<8x16xf32, #tpu.memory_space<vmem>>, vector<8x16xf32>,
    return
  }
  func.func @transform_0(%arg0: i32, %arg1: i32) -> (i32, i32) {
    %c0_i32 = arith.constant 0 : i32
    %c0_i32_0 = arith.constant 0 : i32
    return %arg0, %c0_i32 : i32, i32
  }
  func.func @transform_1(%arg0: i32, %arg1: i32) -> (i32, i32) {
    %c0_i32 = arith.constant 0 : i32
    %c0_i32_0 = arith.constant 0 : i32
    return %arg1, %c0_i32 : i32, i32
  }
  func.func @transform_2(%arg0: i32, %arg1: i32) -> (i32, i32) {
    %c0_i32 = arith.constant 0 : i32
    %c0_i32_0 = arith.constant 0 : i32
    return %c0_i32, %arg1 : i32, i32
  }
  func.func @transform_3(%arg0: i32, %arg1: i32) -> (i32, i32) {
    %c0_i32 = arith.constant 0 : i32
    return %arg0, %arg1 : i32, i32
  }
}

</mosaic_0001>

<bundles_post_ra>
// kernel: linear_regression_forward.1
= control target key start
LH: loop header
LB: loop body
LE: loop exit
PB: predicated region body
PF: predicated region fallthrough
CT: control target
= control target key end

     0   :  { %8 = vsyncpa [#allocation3], 0  ;;  %s275_s0 = inlined_call_operand.hbm [shape: f32[8,32], index: 0, kind: input, shape index: {}]   ;;  %s276_s1 = inlined_call_operand.hbm [shape: f32[16,32], index: 1, kind: input, shape index: {}]   ;;  %s277_s2 = inlined_call_operand.vmem [shape: f32[1,16], index: 2, kind: input, shape index: {}]   ;;  %s278_s3 = inlined_call_operand.hbm [shape: f32[8,16], index: 3, kind: output, shape index: {}]  }
   0x1   :  { %9 = vsyncpa [#allocation6], 0 }
   0x2   :  { %10 = vsyncpa [#allocation4], 0  ;;  %s236_s12 = smov [#allocation2]   ;;  %s237_s14 = smov [#allocation5]  }
   0x3   :  { %s17_s13 = sshll.u32 %s236_s12, 4  ;;  %s26_s15 = sshll.u32 %s237_s14, 4  ;;  %s18_s13 = int_to_ptr.vmem [resolvable:$true] %s17_s13  ;;  %s27_s15 = int_to_ptr.vmem [resolvable:$true] %s26_s15 }
   0x4   :  { %s178_s16 = scalar_lea.vmem %s18_s13, 128  ;;  %p183_p1 = scmp.lt.s32.totalorder %s18_s13, %s18_s13 }
   0x5   :  { %p179_p0 = scmp.ne.s32.totalorder %s18_s13, %s178_s16  ;;  %p184_p2 = scmp.lt.s32.totalorder %s178_s16, %s178_s16 }
   0x7   :  { %p185_p3 = por %p184_p2, %p183_p1 }
   0x9   :  { %p186_p4 = pnand %p185_p3, %p179_p0 }
   0xb   :  { %189 = shalt.err (!%p186_p4)
}
   0xc   :  { %20 = dma.hbm_to_vmem [thread:$0]  %s275_s0, 128, %s18_s13, [#allocation3]  }
   0xd   :  { %s198_s19 = scalar_lea.vmem %s27_s15, 256  ;;  %p203_p6 = scmp.lt.s32.totalorder %s27_s15, %s27_s15 }
   0xe   :  { %p199_p5 = scmp.ne.s32.totalorder %s27_s15, %s198_s19  ;;  %p204_p7 = scmp.lt.s32.totalorder %s198_s19, %s198_s19 }
  0x10   :  { %p205_p8 = por %p204_p7, %p203_p6 }
  0x12   :  { %p206_p9 = pnand %p205_p8, %p199_p5 }
  0x14   :  { %209 = shalt.err (!%p206_p9)
}
  0x15   :  { %s238_s20 = smov 128   ;;  %s239_s21 = smov 8  }
  0x16   :  { %32 = dma.hbm_to_vmem [thread:$0]  %s276_s1, 256, %s27_s15, [#allocation6], %s238_s20, %s238_s20, %s239_s21  }
  0x17   :  { %230 = dma.done.wait [#allocation3], 128  }
  0x18   :  { %231 = vsyncadd [#allocation3], 4294967168 }
  0x19   :  { %232 = dma.done.wait [#allocation6], 256  }
  0x1a   :  { %233 = vsyncadd [#allocation6], 4294967040  ;;  %v240_v0 = vmov 0.0   ;;  %vm241_vm0 = vmmov 0   ;;  %vm51_vm1 = vcmask 261120   ;;  %v43_v1 = vld [vmem:[#allocation5 + $0x8] sm:$0xff] }
  0x1b   :  { %156 = vmatprep.subr.mxu0 %v240_v0  ;;  %160 = vmatprep.mubr.msk.f32.mxu0 %vm241_vm0, %v240_v0  ;;  %v42_v2 = vld [vmem:[#allocation5] sm:$0xff]  ;;  %v41_v3 = vld [vmem:[#allocation2] sm:$0xff]  ;;  %s242_s1 = smov [#allocation7]   ;;  %vm131_vm2 = vcmask 130048  }
  0x1c   :  { %157 = vmatpush3.xpose.msk.msra.mxu0 %vm51_vm1, %v43_v1  ;;  %v149_v4 = vld [vmem:[%s277_s2] ss:$0 sm:$0xff]  ;;  %s139_s25 = sshll.u32 %s242_s1, 4  ;;  %s140_s25 = int_to_ptr.vmem [resolvable:$true] %s139_s25 }
  0x1d   :  { %158 = vmatprep.subr.mxu0 %v240_v0  ;;  %s210_s26 = scalar_lea.vmem %s140_s25, 128  ;;  %p215_p11 = scmp.lt.s32.totalorder %s140_s25, %s140_s25 }
  0x1e   :  { %p211_p10 = scmp.ne.s32.totalorder %s140_s25, %s210_s26  ;;  %p216_p12 = scmp.lt.s32.totalorder %s210_s26, %s210_s26 }
  0x20   :  { %159 = vmatpush3.xpose.msk.msra.mxu0 %vm51_vm1, %v42_v2  ;;  %p217_p13 = por %p216_p12, %p215_p11 }
  0x22   :  { %p218_p0 = pnand %p217_p13, %p211_p10 }
  0x23   :  { %161 = vmatmul.mubr.msk.f32.vlgmr.msra.gmra.mxu0 %vm51_vm1, %v41_v3 }
  0xe3   :  { %v127_v5 = vpop.f32.mrf.mxu0 }
  0xe4   :  { %v128_v6 = vadd.f32 %v149_v4, %v127_v5 }
  0xe5   :  { %v162_v7 = vpop.f32.mrf.mxu0 }
  0xe6   :  { %132 = vst.msk [vmem:[#allocation7] sm:$0xff] %vm131_vm2, %v128_v6 }
  0xe7   :  { %221 = shalt.err (!%p218_p0)
}
  0xe8   :  { %142 = dma.vmem_to_hbm [thread:$0]  %s140_s25, 128, %s278_s3, [#allocation4]  }
  0xe9   :  { %234 = dma.done.wait [#allocation4], 128  }
  0xea   :  { %235 = vsyncadd [#allocation4], 4294967168 }
  0xeb   :  { %146 = vsyncpa [#allocation3], 1 }
  0xec   :  { %147 = vsyncpa [#allocation6], 1 }
  0xed   :  { %148 = vsyncpa [#allocation4], 1 }

</bundles_post_ra>
